<compile_context>
chip_gen: v7x
topology: tpu7x:2x2x1
jax: 0.10.0
libtpu: 0.0.40
codegen_flags: <defaults>
</compile_context>

<pallas_src>
import functools
import math

import jax
import jax.numpy as jnp
from jax.experimental import pallas as pl
from jax.experimental.pallas import tpu as pltpu

NUM_GROUPS = 32
EPS = 1e-3  # matches nn.GroupNorm(32, out_channels, eps=0.001)


def fc_gn_relu_kernel(x_ref, w_ref, b_ref, beta_ref, gfwd_ref, gmean_ref, gscale_ref,
                      o_ref):
    # x_ref: (TM, TK)         w_ref: (TK, Cp)
    # b_ref / beta_ref: (1, Cp)
    # gfwd_ref: (Cp, G)  one-hot / group_size        (channel -> group averaging)
    # gmean_ref: (G, Cp) one-hot                      (group -> channel scatter)
    # gscale_ref: (G, Cp) one-hot * gamma             (group -> channel scatter, affine fused)
    # o_ref: (TM, Cp) f32 -- doubles as the K-reduction accumulator.
    k = pl.program_id(1)

    @pl.when(k == 0)
    def _init():
        o_ref[...] = jnp.zeros_like(o_ref)

    # ---- Linear accumulation over K tiles (MXU, f32 accumulation) ----
    o_ref[...] += jnp.dot(x_ref[...], w_ref[...], preferred_element_type=jnp.float32)

    @pl.when(k == pl.num_programs(1) - 1)
    def _epilogue():
        y = o_ref[...] + b_ref[...]                                   # (TM, Cp)

        # Group statistics via MXU (1/gs folded into gfwd); padded channels have
        # all-zero rows in gfwd so they never contaminate the stats.
        mean_g = jnp.dot(y, gfwd_ref[...], preferred_element_type=jnp.float32)
        sqmean_g = jnp.dot(y * y, gfwd_ref[...], preferred_element_type=jnp.float32)

        # Clamp to avoid negative variance from f32 cancellation.
        var_g = jnp.maximum(sqmean_g - mean_g * mean_g, 0.0)
        inv_std_g = jax.lax.rsqrt(var_g + EPS)                        # (TM, G)

        # Scatter group stats back to channels (gamma folded into gscale).
        # NOTE: if profiling shows this G=32-wide matmul binding the MXU for small K,
        # it can be replaced by a lane-repeat on the XLU.
        mean_c = jnp.dot(mean_g, gmean_ref[...], preferred_element_type=jnp.float32)
        scale_c = jnp.dot(inv_std_g, gscale_ref[...], preferred_element_type=jnp.float32)

        out = (y - mean_c) * scale_c + beta_ref[...]
        o_ref[...] = jnp.maximum(out, 0.0).astype(o_ref.dtype)


def _choose_tiles(N, K, C_pad, tm_request, tk_request):
    """Pick (TM, TK, vmem_limit_bytes) from an accurate per-step VMEM model."""
    G = NUM_GROUPS
    n_pad8 = -(-N // 8) * 8
    budget = 24 * 1024 * 1024  # conservative across v5e/v6e and v7x (64 MiB/TC)

    def footprint(tm_, tk_):
        # Pallas double-buffers EVERY input block (even constant index_maps) and the
        # output block; in-kernel temporaries (y, y*y, mean_c/scale_c) ~ 3x (TM, Cp).
        dbl = (tm_ * tk_           # x tile
               + tk_ * C_pad       # weight tile
               + 3 * C_pad * G     # gfwd + gmean + gscale
               + 2 * C_pad         # bias + beta
               + tm_ * C_pad)      # output tile
        temps = 3 * tm_ * C_pad
        return 4 * (2 * dbl + temps)

    tm = max(8, min(-(-tm_request // 8) * 8, n_pad8))
    tk = tk_request if tk_request is not None else K
    while footprint(tm, tk) > budget:
        if tk > 128:
            # Shrink the K tile first: TM (the HBM-roofline lever) stays large and
            # the (K, C) weight never has to be fully VMEM-resident.
            tk = max(128, ((tk // 2) // 128) * 128)
        elif tm > 8:
            tm = max(8, ((tm // 2) // 8) * 8)
        else:
            break

    # Guarantee >= 2 batch grid steps so ("parallel", ...) can shard the batch axis
    # across both TensorCores on v7x (neutral on v5e/v6e).
    if n_pad8 >= 16 and tm >= n_pad8:
        tm = max(8, ((n_pad8 // 2) // 8) * 8)

    limit = int(min(max(footprint(tm, tk) * 3 // 2, 16 * 1024 * 1024),
                    48 * 1024 * 1024))
    return tm, tk, limit


@functools.partial(jax.jit, static_argnames=("tm", "tk", "use_bf16"))
def basic_fc_gn(x, w, b, gamma, beta, *, tm=512, tk=None, use_bf16=False):
    """x: (N, K) f32; w: (K, C) (pre-transposed FC weight); b/gamma/beta: (C,).

    Returns (N, C) f32 = relu(group_norm_32(x @ w + b) * gamma + beta).
    """
    N, K = x.shape
    Kw, C = w.shape
    assert Kw == K
    assert C % NUM_GROUPS == 0
    G = NUM_GROUPS
    gs = C // G

    # ---- Lane-dense channel padding (multiple of 128) ----
    C_pad = pl.cdiv(C, 128) * 128

    # ---- Tile selection + padding ----
    TM, TK, vmem_limit = _choose_tiles(N, K, C_pad, tm, tk)
    n_pad8 = pl.cdiv(N, 8) * 8
    n_padded = pl.cdiv(n_pad8, TM) * TM
    K_padded = pl.cdiv(K, TK) * TK

    if n_padded != N or K_padded != K:
        x = jnp.pad(x, ((0, n_padded - N), (0, K_padded - K)))
    if K_padded != K or C_pad != C:
        w = jnp.pad(w, ((0, K_padded - K), (0, C_pad - C)))
    b2 = jnp.pad(b, (0, C_pad - C)).reshape(1, C_pad)
    beta2 = jnp.pad(beta, (0, C_pad - C)).reshape(1, C_pad)
    gamma_pad = jnp.pad(gamma, (0, C_pad - C))

    # ---- Host-built group one-hot matrices (built once, VMEM-resident in-kernel) ----
    ch = jnp.arange(C_pad, dtype=jnp.int32)
    grp = jnp.arange(G, dtype=jnp.int32)
    member = (ch[:, None] // gs) == grp[None, :]          # (C_pad, G); padded rows all 0
    gfwd = member.astype(jnp.float32) * (1.0 / gs)        # folds the 1/gs averaging
    memT = member.T.astype(jnp.float32)                   # (G, C_pad)
    gmean = memT
    gscale = memT * gamma_pad[None, :]                    # folds gamma into the scatter

    if use_bf16:
        # Optional fast path for v6e/v7x: bf16 operands, f32 accumulation, f32 GN math.
        x = x.astype(jnp.bfloat16)
        w = w.astype(jnp.bfloat16)

    grid = (n_padded // TM, K_padded // TK)

    out = pl.pallas_call(
        fc_gn_relu_kernel,
        out_shape=jax.ShapeDtypeStruct((n_padded, C_pad), jnp.float32),
        grid_spec=pltpu.PrefetchScalarGridSpec(
            num_scalar_prefetch=0,
            grid=grid,
            in_specs=[
                pl.BlockSpec((TM, TK), lambda i, k: (i, k)),      # x: batch x K tiles
                pl.BlockSpec((TK, C_pad), lambda i, k: (k, 0)),   # weight: K tiles
                pl.BlockSpec((1, C_pad), lambda i, k: (0, 0)),    # bias
                pl.BlockSpec((1, C_pad), lambda i, k: (0, 0)),    # beta
                pl.BlockSpec((C_pad, G), lambda i, k: (0, 0)),    # gfwd (one-hot / gs)
                pl.BlockSpec((G, C_pad), lambda i, k: (0, 0)),    # gmean (one-hot)
                pl.BlockSpec((G, C_pad), lambda i, k: (0, 0)),    # gscale (one-hot * gamma)
            ],
            out_specs=pl.BlockSpec((TM, C_pad), lambda i, k: (i, 0)),
        ),
        compiler_params=pltpu.CompilerParams(
            # batch tiles are independent (shards across both TCs on v7x);
            # K is a reduction accumulated into the resident output block.
            dimension_semantics=("parallel", "arbitrary"),
            vmem_limit_bytes=vmem_limit,
        ),
    )(x, w, b2, beta2, gfwd, gmean, gscale)
    return out[:N, :C]


def _reference(x, w, b, gamma, beta):
    y = x @ w + b[None, :]
    N, C = y.shape
    yg = y.reshape(N, NUM_GROUPS, C // NUM_GROUPS)
    mean = yg.mean(axis=-1, keepdims=True)
    var = ((yg - mean) ** 2).mean(axis=-1, keepdims=True)
    yh = ((yg - mean) / jnp.sqrt(var + EPS)).reshape(N, C)
    return jnp.maximum(yh * gamma[None, :] + beta[None, :], 0.0)


if __name__ == "__main__":
    key = jax.random.PRNGKey(0)

    def make_inputs(k, N, K, C, random_affine=False):
        kx, kw, kb, kg, kbe = jax.random.split(k, 5)
        x = jax.random.normal(kx, (N, K), dtype=jnp.float32)
        bound = 1.0 / math.sqrt(K)
        w = jax.random.uniform(kw, (K, C), minval=-bound, maxval=bound,
                               dtype=jnp.float32)
        b = jax.random.uniform(kb, (C,), minval=-bound, maxval=bound,
                               dtype=jnp.float32)
        if random_affine:
            gamma = 1.0 + 0.5 * jax.random.normal(kg, (C,), dtype=jnp.float32)
            beta = 0.1 * jax.random.normal(kbe, (C,), dtype=jnp.float32)
        else:
            gamma = jnp.ones((C,), dtype=jnp.float32)   # nn.GroupNorm default
            beta = jnp.zeros((C,), dtype=jnp.float32)
        return x, w, b, gamma, beta

    k1, k2 = jax.random.split(key)

    # --- Config 1: small shapes; batch padding + multi batch-step path (tm=8). ---
    N, K, C = 20, 64, 128
    x, w, b, gamma, beta = make_inputs(k1, N, K, C)
    ref = _reference(x, w, b, gamma, beta)

    out = jax.block_until_ready(basic_fc_gn(x, w, b, gamma, beta, tm=8))
    assert out.shape == (N, C)
    assert jnp.allclose(out, ref, atol=5e-4, rtol=5e-4), "mismatch (tm=8)"

    # Default tm: the >=2-grid-step rule kicks in (v7x 2-TC sharding path).
    out2 = jax.block_until_ready(basic_fc_gn(x, w, b, gamma, beta))
    assert jnp.allclose(out2, ref, atol=5e-4, rtol=5e-4), "mismatch (default tm)"

    # Optional bf16 main-matmul path (looser tolerance vs f32 reference).
    out_bf16 = jax.block_until_ready(basic_fc_gn(x, w, b, gamma, beta, use_bf16=True))
    assert jnp.allclose(out_bf16, ref, atol=1e-1, rtol=1e-1), "mismatch (bf16)"

    # --- Config 2: K-reduction axis (K padded to 256, 2 k-steps), C padded 96->128,
    #     non-trivial gamma/beta. ---
    N2, K2, C2 = 17, 200, 96
    x2, w2, b2, g2, be2 = make_inputs(k2, N2, K2, C2, random_affine=True)
    ref2 = _reference(x2, w2, b2, g2, be2)
    out3 = jax.block_until_ready(basic_fc_gn(x2, w2, b2, g2, be2, tm=8, tk=128))
    assert out3.shape == (N2, C2)
    assert jnp.allclose(out3, ref2, atol=5e-4, rtol=5e-4), "mismatch (K/C padded path)"

    print("KERNEL_OK")
</pallas_src>

<mosaic_0001>
module attributes {stable_mosaic.version = 11 : i64} {
  func.func @fc_gn_relu_kernel(%arg0: i32, %arg1: i32, %arg2: memref<8x64xf32, #tpu.memory_space<vmem>>, %arg3: memref<64x128xf32, #tpu.memory_space<vmem>>, %arg4: memref<1x128xf32, #tpu.memory_space<vmem>>, %arg5: memref<1x128xf32, #tpu.memory_space<vmem>>, %arg6: memref<128x32xf32, #tpu.memory_space<vmem>>, %arg7: memref<32x128xf32, #tpu.memory_space<vmem>>, %arg8: memref<32x128xf32, #tpu.memory_space<vmem>>, %arg9: memref<8x128xf32, #tpu.memory_space<vmem>>) attributes {dimension_semantics = [#tpu.dimension_semantics<parallel>, #tpu.dimension_semantics<arbitrary>], iteration_bounds = array<i64: 3, 1>, scalar_prefetch = 0 : i64, scratch_operands = 0 : i64, tpu.core_type = #tpu.core_type<tc>, window_params = [{transform_indices = @transform_0, window_bounds = array<i64: 8, 64>}, {transform_indices = @transform_1, window_bounds = array<i64: 64, 128>}, {pipeline_mode = #tpu.pipeline_mode<synchronous>, transform_indices = @transform_2, window_bounds = array<i64: 1, 128>}, {pipeline_mode = #tpu.pipeline_mode<synchronous>, transform_indices = @transform_3, window_bounds = array<i64: 1, 128>}, {pipeline_mode = #tpu.pipeline_mode<synchronous>, transform_indices = @transform_4, window_bounds = array<i64: 128, 32>}, {pipeline_mode = #tpu.pipeline_mode<synchronous>, transform_indices = @transform_5, window_bounds = array<i64: 32, 128>}, {pipeline_mode = #tpu.pipeline_mode<synchronous>, transform_indices = @transform_6, window_bounds = array<i64: 32, 128>}, {transform_indices = @transform_7, window_bounds = array<i64: 8, 128>}]} {
    %c0_i32 = arith.constant 0 : i32
    %0 = arith.cmpi eq, %arg1, %c0_i32 : i32
    %1 = arith.extui %0 : i1 to i32
    %c0_i32_0 = arith.constant 0 : i32
    %2 = arith.cmpi ne, %1, %c0_i32_0 : i32
    scf.if %2 {
      %cst_10 = arith.constant 0.000000e+00 : f32
      %12 = vector.broadcast %cst_10 : f32 to vector<8x128xf32>
      %c0_11 = arith.constant 0 : index
      %c0_12 = arith.constant 0 : index
      %13 = vector.load %arg9[%c0_11, %c0_12] : memref<8x128xf32, #tpu.memory_space<vmem>>, vector<8x128xf32>
      tpu.vector_store %arg9[%c0_11, %c0_12], %12 {strides = array<i32>} : memref<8x128xf32, #tpu.memory_space<vmem>>, vector<8x128xf32>,
    } else {
    }
    %c0 = arith.constant 0 : index
    %c0_1 = arith.constant 0 : index
    %3 = vector.load %arg9[%c0, %c0_1] : memref<8x128xf32, #tpu.memory_space<vmem>>, vector<8x128xf32>
    %c0_2 = arith.constant 0 : index
    %c0_3 = arith.constant 0 : index
    %4 = vector.load %arg2[%c0_2, %c0_3] : memref<8x64xf32, #tpu.memory_space<vmem>>, vector<8x64xf32>
    %c0_4 = arith.constant 0 : index
    %c0_5 = arith.constant 0 : index
    %5 = vector.load %arg3[%c0_4, %c0_5] : memref<64x128xf32, #tpu.memory_space<vmem>>, vector<64x128xf32>
    %cst = arith.constant dense<0.000000e+00> : vector<8x128xf32>
    %6 = tpu.matmul %4, %5, %cst {dimension_numbers = #tpu.dot_dimension_numbers<[1], [0], [0], [1], [0, 0, 1, 1], [], []>} : vector<8x64xf32>, vector<64x128xf32>, vector<8x128xf32> -> vector<8x128xf32>
    %7 = arith.addf %3, %6 : vector<8x128xf32>
    %c0_6 = arith.constant 0 : index
    %c0_7 = arith.constant 0 : index
    %8 = vector.load %arg9[%c0_6, %c0_7] : memref<8x128xf32, #tpu.memory_space<vmem>>, vector<8x128xf32>
    tpu.vector_store %arg9[%c0_6, %c0_7], %7 {strides = array<i32>} : memref<8x128xf32, #tpu.memory_space<vmem>>, vector<8x128xf32>,
    %c0_i32_8 = arith.constant 0 : i32
    %9 = arith.cmpi eq, %arg1, %c0_i32_8 : i32
    %10 = arith.extui %9 : i1 to i32
    %c0_i32_9 = arith.constant 0 : i32
    %11 = arith.cmpi ne, %10, %c0_i32_9 : i32
    scf.if %11 {
      %c0_10 = arith.constant 0 : index
      %c0_11 = arith.constant 0 : index
      %12 = vector.load %arg9[%c0_10, %c0_11] : memref<8x128xf32, #tpu.memory_space<vmem>>, vector<8x128xf32>
      %c0_12 = arith.constant 0 : index
      %c0_13 = arith.constant 0 : index
      %13 = vector.load %arg4[%c0_12, %c0_13] : memref<1x128xf32, #tpu.memory_space<vmem>>, vector<1x128xf32>
      %14 = vector.broadcast %13 : vector<1x128xf32> to vector<8x128xf32>
      %15 = arith.addf %12, %14 : vector<8x128xf32>
      %c0_14 = arith.constant 0 : index
      %c0_15 = arith.constant 0 : index
      %16 = vector.load %arg6[%c0_14, %c0_15] : memref<128x32xf32, #tpu.memory_space<vmem>>, vector<128x32xf32>
      %cst_16 = arith.constant dense<0.000000e+00> : vector<8x32xf32>
      %17 = tpu.matmul %15, %16, %cst_16 {dimension_numbers = #tpu.dot_dimension_numbers<[1], [0], [0], [1], [0, 0, 1, 1], [], []>} : vector<8x128xf32>, vector<128x32xf32>, vector<8x32xf32> -> vector<8x32xf32>
      %18 = arith.mulf %15, %15 : vector<8x128xf32>
      %c0_17 = arith.constant 0 : index
      %c0_18 = arith.constant 0 : index
      %19 = vector.load %arg6[%c0_17, %c0_18] : memref<128x32xf32, #tpu.memory_space<vmem>>, vector<128x32xf32>
      %cst_19 = arith.constant dense<0.000000e+00> : vector<8x32xf32>
      %20 = tpu.matmul %18, %19, %cst_19 {dimension_numbers = #tpu.dot_dimension_numbers<[1], [0], [0], [1], [0, 0, 1, 1], [], []>} : vector<8x128xf32>, vector<128x32xf32>, vector<8x32xf32> -> vector<8x32xf32>
      %21 = arith.mulf %17, %17 : vector<8x32xf32>
      %22 = arith.subf %20, %21 : vector<8x32xf32>
      %cst_20 = arith.constant 0.000000e+00 : f32
      %23 = vector.broadcast %cst_20 : f32 to vector<8x32xf32>
      %24 = arith.maximumf %22, %23 : vector<8x32xf32>
      %cst_21 = arith.constant 1.000000e-03 : f32
      %25 = vector.broadcast %cst_21 : f32 to vector<8x32xf32>
      %26 = arith.addf %24, %25 : vector<8x32xf32>
      %27 = math.rsqrt %26 : vector<8x32xf32>
      %c0_22 = arith.constant 0 : index
      %c0_23 = arith.constant 0 : index
      %28 = vector.load %arg7[%c0_22, %c0_23] : memref<32x128xf32, #tpu.memory_space<vmem>>, vector<32x128xf32>
      %cst_24 = arith.constant dense<0.000000e+00> : vector<8x128xf32>
      %29 = tpu.matmul %17, %28, %cst_24 {dimension_numbers = #tpu.dot_dimension_numbers<[1], [0], [0], [1], [0, 0, 1, 1], [], []>} : vector<8x32xf32>, vector<32x128xf32>, vector<8x128xf32> -> vector<8x128xf32>
      %c0_25 = arith.constant 0 : index
      %c0_26 = arith.constant 0 : index
      %30 = vector.load %arg8[%c0_25, %c0_26] : memref<32x128xf32, #tpu.memory_space<vmem>>, vector<32x128xf32>
      %cst_27 = arith.constant dense<0.000000e+00> : vector<8x128xf32>
      %31 = tpu.matmul %27, %30, %cst_27 {dimension_numbers = #tpu.dot_dimension_numbers<[1], [0], [0], [1], [0, 0, 1, 1], [], []>} : vector<8x32xf32>, vector<32x128xf32>, vector<8x128xf32> -> vector<8x128xf32>
      %32 = arith.subf %15, %29 : vector<8x128xf32>
      %33 = arith.mulf %32, %31 : vector<8x128xf32>
      %c0_28 = arith.constant 0 : index
      %c0_29 = arith.constant 0 : index
      %34 = vector.load %arg5[%c0_28, %c0_29] : memref<1x128xf32, #tpu.memory_space<vmem>>, vector<1x128xf32>
      %35 = vector.broadcast %34 : vector<1x128xf32> to vector<8x128xf32>
      %36 = arith.addf %33, %35 : vector<8x128xf32>
      %cst_30 = arith.constant 0.000000e+00 : f32
      %37 = vector.broadcast %cst_30 : f32 to vector<8x128xf32>
      %38 = arith.maximumf %36, %37 : vector<8x128xf32>
      %c0_31 = arith.constant 0 : index
      %c0_32 = arith.constant 0 : index
      %39 = vector.load %arg9[%c0_31, %c0_32] : memref<8x128xf32, #tpu.memory_space<vmem>>, vector<8x128xf32>
      tpu.vector_store %arg9[%c0_31, %c0_32], %38 {strides = array<i32>} : memref<8x128xf32, #tpu.memory_space<vmem>>, vector<8x128xf32>,
    } else {
    }
    return
  }
  func.func @transform_0(%arg0: i32, %arg1: i32) -> (i32, i32) {
    %c0_i32 = arith.constant 0 : i32
    return %arg0, %arg1 : i32, i32
  }
  func.func @transform_1(%arg0: i32, %arg1: i32) -> (i32, i32) {
    %c0_i32 = arith.constant 0 : i32
    %c0_i32_0 = arith.constant 0 : i32
    return %arg1, %c0_i32 : i32, i32
  }
  func.func @transform_2(%arg0: i32, %arg1: i32) -> (i32, i32) {
    %c0_i32 = arith.constant 0 : i32
    %c0_i32_0 = arith.constant 0 : i32
    %c0_i32_1 = arith.constant 0 : i32
    return %c0_i32, %c0_i32_0 : i32, i32
  }
  func.func @transform_3(%arg0: i32, %arg1: i32) -> (i32, i32) {
    %c0_i32 = arith.constant 0 : i32
    %c0_i32_0 = arith.constant 0 : i32
    %c0_i32_1 = arith.constant 0 : i32
    return %c0_i32, %c0_i32_0 : i32, i32
  }
  func.func @transform_4(%arg0: i32, %arg1: i32) -> (i32, i32) {
    %c0_i32 = arith.constant 0 : i32
    %c0_i32_0 = arith.constant 0 : i32
    %c0_i32_1 = arith.constant 0 : i32
    return %c0_i32, %c0_i32_0 : i32, i32
  }
  func.func @transform_5(%arg0: i32, %arg1: i32) -> (i32, i32) {
    %c0_i32 = arith.constant 0 : i32
    %c0_i32_0 = arith.constant 0 : i32
    %c0_i32_1 = arith.constant 0 : i32
    return %c0_i32, %c0_i32_0 : i32, i32
  }
  func.func @transform_6(%arg0: i32, %arg1: i32) -> (i32, i32) {
    %c0_i32 = arith.constant 0 : i32
    %c0_i32_0 = arith.constant 0 : i32
    %c0_i32_1 = arith.constant 0 : i32
    return %c0_i32, %c0_i32_0 : i32, i32
  }
  func.func @transform_7(%arg0: i32, %arg1: i32) -> (i32, i32) {
    %c0_i32 = arith.constant 0 : i32
    %c0_i32_0 = arith.constant 0 : i32
    return %arg0, %c0_i32 : i32, i32
  }
}

</mosaic_0001>

<bundles_post_ra>
// kernel: basic_fc_gn.1
= control target key start
LH: loop header
LB: loop body
LE: loop exit
PB: predicated region body
PF: predicated region fallthrough
CT: control target
= control target key end

     0   :  { %12 = vsyncpa [#allocation3], 0  ;;  %s1537_s0 = inlined_call_operand.vmem [shape: f32[24,64], index: 0, kind: input, shape index: {}]   ;;  %s1538_s1 = inlined_call_operand.vmem [shape: f32[64,128], index: 1, kind: input, shape index: {}]   ;;  %s1539_s2 = inlined_call_operand.vmem [shape: f32[1,128], index: 2, kind: input, shape index: {}]   ;;  %s1540_s3 = inlined_call_operand.vmem [shape: f32[1,128], index: 3, kind: input, shape index: {}]   ;;  %s1541_s4 = inlined_call_operand.vmem [shape: f32[128,32], index: 4, kind: input, shape index: {}]   ;;  %s1542_s5 = inlined_call_operand.vmem [shape: f32[32,128], index: 5, kind: input, shape index: {}]   ;;  %s1543_s6 = inlined_call_operand.vmem [shape: f32[32,128], index: 6, kind: input, shape index: {}]   ;;  %s1544_s7 = inlined_call_operand.hbm [shape: f32[24,128], index: 7, kind: output, shape index: {}]  }
   0x1   :  { %14 = vsyncpa [#allocation3 + $0x1], 0  ;;  %s1287_s24 = smov 0   ;;  %s1289_s25 = smov 0  }
   0x2   :  { %s1291_s26 = smov 0   ;;  %s1293_s27 = smov 0  }
   0x3   :  { %s1295_s28 = smov 0   ;;  %s1297_s29 = smov 0  }
   0x4 LB: > { %s850_s30 = sadd.s32 4294967295, %s1241_s29   ;;  %s851_s8 = sadd.s32 4294967294, %s1241_s29   ;;  %s1241_s29 = sphi %s1297_s29, %s20_s29   ;;  %s1237_s28 = sphi %s1295_s28, %s1551_s28   ;;  %s1233_s27 = sphi %s1293_s27, %s1550_s27   ;;  %s1229_s26 = sphi %s1291_s26, %s1549_s26   ;;  %s1225_s25 = sphi %s1289_s25, %s1548_s25   ;;  %s1221_s24 = sphi %s1287_s24, %s1547_s24  }
   0x5   : > { %s32_s9 = sadd.s32 1, %s1237_s28  ;;  %s198_s10 = sadd.s32 1, %s1229_s26 }
   0x6   : > { %p34_p0 = scmp.ge.s32.totalorder %s32_s9, 3  ;;  %p208_p1 = scmp.ne.s32.totalorder %s1229_s26, %s1225_s25 }
   0x7   : > { %p209_p2 = scmp.eq.s32.totalorder %s850_s30, 2  ;;  %p214_p3 = scmp.ne.s32.totalorder %s1225_s25, %s1221_s24 }
   0x8   : > { %s1553_s9 = smov (%p34_p0, %s32_s9), 0  ;;  %p215_p5 = scmp.eq.s32.totalorder %s851_s8, 2 }
   0x9   : > { %p1327_p4 = por %p209_p2, %p208_p1  ;;  %s195_s12 = ssub.s32 %s1237_s28, %s1553_s9 }
   0xa   : > { %p855_p6 = scmp.ge.s32.totalorder %s1241_s29, 1  ;;  %p196_p7 = scmp.eq.s32.totalorder %s195_s12, 0 }
   0xb   : > { %p1334_p8 = por %p215_p5, %p214_p3  ;;  %p267_p9 = scmp.lt.s32.totalorder %s1241_s29, 4 }
   0xc   : > { %s1340_s14 = scalar_select %p196_p7, %s1229_s26, %s198_s10  }
   0xd   : > { %p268_p10 = pnand %p855_p6, %p267_p9 }
   0xe   : > { %v326_v0 = vld [vmem:[%s1538_s1] sm:$0xff] (!%p268_p10)  ;;  %v327_v1 = vld [vmem:[%s1538_s1 + $0x8] sm:$0xff] (!%p268_p10)  ;;  %v328_v2 = vld [vmem:[%s1538_s1 + $0x10] sm:$0xff] (!%p268_p10)  ;;  %v1243_v3 = vmov (!%p268_p10), 0.0|0.0   ;;  %vm1244_vm0 = vmmov (!%p268_p10), 0   ;;  %v1245_v6 = vmov (!%p268_p10), 0.0  }
   0xf   : > { %271 = sbr.rel (%p268_p10) target bundleno = 709 (0x2c5), region = 48  ;;  %1031 = vmatprep.subr.bf16.mxu0 (!%p268_p10), %v1243_v3  ;;  %v1032_v4 = vpack.c.bf16 (!%p268_p10), %v327_v1, %v326_v0  ;;  %v329_v5 = vld [vmem:[%s1538_s1 + $0x18] sm:$0xff] (!%p268_p10)  ;;  %936 = vmatprep.mubr.msk.f32.mxu0 (!%p268_p10), %vm1244_vm0, %v1245_v6  ;;  %p306_p11 = scmp.lt.s32.totalorder (!%p268_p10), %s1233_s27, 2  ;;  %v422_v7 = vld [vmem:[%s1541_s4] sm:$0xff] (!%p268_p10)  ;;  %v423_v9 = vld [vmem:[%s1541_s4 + $0x8] sm:$0xff] (!%p268_p10)  ;;  %vm334_vm1 = vcmask (!%p268_p10), 523264  }
  0x10   : > { %1043 = vmatprep.subr.bf16.mxu1 (!%p268_p10), %v1243_v3  ;;  %971 = vmatprep.mubr.msk.f32.mxu1 (!%p268_p10), %vm1244_vm0, %v1245_v6  ;;  %v1035_v8 = vpack.c.bf16 (!%p268_p10), %v329_v5, %v328_v2  ;;  %v424_v10 = vld [vmem:[%s1541_s4 + $0x10] sm:$0xff] (!%p268_p10)  ;;  %v425_v11 = vld [vmem:[%s1541_s4 + $0x18] sm:$0xff] (!%p268_p10)  ;;  %v330_v12 = vld [vmem:[%s1538_s1 + $0x20] sm:$0xff] (!%p268_p10)  ;;  %v1044_v14 = vpack.c.bf16 (!%p268_p10), %v423_v9, %v422_v7  ;;  %vm588_vm2 = vcmask (!%p268_p10), 261120   ;;  %s303_s21 = sand.u32 (!%p268_p10), 1, %s1225_s25  }
  0x11   : > { %1033 = vmatpush3.bf16.msra.mxu0 (!%p268_p10), %v1032_v4  ;;  %v331_v13 = vld [vmem:[%s1538_s1 + $0x28] sm:$0xff] (!%p268_p10)  ;;  %v1047_v15 = vpack.c.bf16 (!%p268_p10), %v425_v11, %v424_v10  ;;  %v426_v17 = vld [vmem:[%s1541_s4 + $0x20] sm:$0xff] (!%p268_p10)  ;;  %v332_v19 = vld [vmem:[%s1538_s1 + $0x30] sm:$0xff] (!%p268_p10)  ;;  %s856_s23 = sshll.u32 (!%p268_p10), %s303_s21, 3 }
  0x12   : > { %1034 = vmatprep.subr.bf16.mxu0 (!%p268_p10), %v1243_v3  ;;  %1045 = vmatpush3.bf16.msra.mxu1 (!%p268_p10), %v1044_v14  ;;  %v1038_v16 = vpack.c.bf16 (!%p268_p10), %v331_v13, %v330_v12  ;;  %v427_v18 = vld [vmem:[%s1541_s4 + $0x28] sm:$0xff] (!%p268_p10)  ;;  %v333_v20 = vld [vmem:[%s1538_s1 + $0x38] sm:$0xff] (!%p268_p10)  ;;  %v428_v23 = vld [vmem:[%s1541_s4 + $0x30] sm:$0xff] (!%p268_p10)  ;;  %s305_s10 = scalar_lea.vmem (!%p268_p10), [#allocation2], %s856_s23 }
  0x13   : > { %1046 = vmatprep.subr.bf16.mxu1 (!%p268_p10), %v1243_v3  ;;  %v1050_v21 = vpack.c.bf16 (!%p268_p10), %v427_v18, %v426_v17  ;;  %v1041_v22 = vpack.c.bf16 (!%p268_p10), %v333_v20, %v332_v19  ;;  %v429_v24 = vld [vmem:[%s1541_s4 + $0x38] sm:$0xff] (!%p268_p10)  ;;  %v430_v27 = vld [vmem:[%s1541_s4 + $0x40] sm:$0xff] (!%p268_p10)  ;;  %v431_v28 = vld [vmem:[%s1541_s4 + $0x48] sm:$0xff] (!%p268_p10)  ;;  %s765_s12 = sshll.u32 (!%p268_p10), %s305_s10, 4  ;;  %s1492_s12 = int_to_ptr.vmem [resolvable:$true] %s765_s12 }
  0x14   : > { %v1053_v25 = vpack.c.bf16 (!%p268_p10), %v429_v24, %v428_v23  ;;  %v1056_v29 = vpack.c.bf16 (!%p268_p10), %v431_v28, %v430_v27  ;;  %v432_v30 = vld [vmem:[%s1541_s4 + $0x50] sm:$0xff] (!%p268_p10)  ;;  %v433_v31 = vld [vmem:[%s1541_s4 + $0x58] sm:$0xff] (!%p268_p10)  ;;  %v434_v33 = vld [vmem:[%s1541_s4 + $0x60] sm:$0xff] (!%p268_p10)  ;;  %s1163_s19 = scalar_lea.vmem (!%p268_p10), %s1492_s12, 128 }
  0x15   : > { %1036 = vmatpush3.bf16.msra.mxu0 (!%p268_p10), %v1035_v8  ;;  %v1059_v32 = vpack.c.bf16 (!%p268_p10), %v433_v31, %v432_v30  ;;  %v435_v34 = vld [vmem:[%s1541_s4 + $0x68] sm:$0xff] (!%p268_p10)  ;;  %v436_v36 = vld [vmem:[%s1541_s4 + $0x70] sm:$0xff] (!%p268_p10)  ;;  %v437_v37 = vld [vmem:[%s1541_s4 + $0x78] sm:$0xff] (!%p268_p10)  ;;  %p1164_p12 = scmp.ne.s32.totalorder (!%p268_p10), %s1492_s12, %s1163_s19 }
  0x16   : > { %s307_s22 = scalar_select %p306_p11, %s1233_s27, 2  ;;  %1037 = vmatprep.subr.bf16.mxu0 %v1243_v3  ;;  %1048 = vmatpush3.bf16.msra.mxu1 %v1047_v15  ;;  %v1062_v35 = vpack.c.bf16 %v435_v34, %v434_v33  ;;  %v1065_v38 = vpack.c.bf16 %v437_v37, %v436_v36  ;;  %v584_v39 = vld [vmem:[%s1542_s5] sm:$0xff]  ;;  %v585_v40 = vld [vmem:[%s1542_s5 + $0x8] sm:$0xff]  ;;  %v586_v46 = vld [vmem:[%s1542_s5 + $0x10] sm:$0xff] }
  0x17   : > { %1049 = vmatprep.subr.bf16.mxu1 %v1243_v3  ;;  %v859_v42 = vld [vmem:[%s1539_s2] ss:$0 sm:$0xff]  ;;  %v1092_v44 = vpack.c.bf16 %v585_v40, %v584_v39  ;;  %v587_v47 = vld [vmem:[%s1542_s5 + $0x18] sm:$0xff]  ;;  %v663_v51 = vld [vmem:[%s1543_s6 + $0x8] sm:$0xff]  ;;  %p1165_p13 = pnand %p1164_p12, %p1327_p4 }
  0x18   : > { %s857_s18 = sshll.u32 %s307_s22, 3  ;;  %v1095_v49 = vpack.c.bf16 %v587_v47, %v586_v46  ;;  %v662_v50 = vld [vmem:[%s1543_s6] sm:$0xff]  ;;  %v664_v53 = vld [vmem:[%s1543_s6 + $0x10] sm:$0xff]  ;;  %v665_v54 = vld [vmem:[%s1543_s6 + $0x18] sm:$0xff] }
  0x19   : > { %1039 = vmatpush3.bf16.msra.mxu0 %v1038_v16  ;;  %s312_s22 = scalar_lea.vmem %s1537_s0, %s857_s18  ;;  %v1098_v52 = vpack.c.bf16 %v663_v51, %v662_v50  ;;  %v1101_v59 = vpack.c.bf16 %v665_v54, %v664_v53  ;;  %s752_s18 = scalar_lea.sflag [#allocation3], %s303_s21 }
  0x1a   : > { %1040 = vmatprep.subr.bf16.mxu0 %v1243_v3  ;;  %1051 = vmatpush3.bf16.msra.mxu1 %v1050_v21  ;;  %v325_v26 = vld [vmem:[%s312_s22] sm:$0xff]  ;;  %s864_s22 = sshll.u32 %s1233_s27, 7  ;;  %p1166_p0 = pneg %p1165_p13 }
  0x1b   : > { %1052 = vmatprep.subr.bf16.mxu1 %v1243_v3  ;;  %s1490_s17 = scalar_lea.hbm %s1544_s7, %s864_s22  ;;  %s1246_s27 = smov [#allocation2]  }
  0x1c   : > { %s1167_s20 = sshll.u32 %s1246_s27, 4  ;;  %s1168_s20 = int_to_ptr.vmem [resolvable:$false] %s1167_s20 }
  0x1d   : > { %1042 = vmatpush3.bf16.msra.mxu0 %v1041_v22  ;;  %s1169_s23 = scalar_lea.vmem %s1168_s20, 256  ;;  %p1170_p1 = scmp.lt.s32.totalorder %s1492_s12, %s1168_s20 }
  0x1e   : > { %1067 = vmatprep.subr.bf16.mxu0 %v1243_v3  ;;  %1054 = vmatpush3.bf16.msra.mxu1 %v1053_v25  ;;  %p1171_p2 = scmp.lt.s32.totalorder %s1169_s23, %s1163_s19 }
  0x1f   : > { %1055 = vmatprep.subr.bf16.mxu1 %v1243_v3 }
  0x20   : > { %937 = vmatmul.mubr.msk.f32.vlgmr.msra.gmra.mrb[0].mxu0 %vm334_vm1, %v325_v26  ;;  %p1172_p3 = por %p1171_p2, %p1170_p1 }
  0x21   : > { %1069 = vmatpush3.bf16.msra.mxu0 %v1044_v14  ;;  %1006 = vmatprep.mubr.msk.f32.mxu0 %vm1244_vm0, %v1245_v6 }
  0x22   : > { %1070 = vmatprep.subr.bf16.mxu0 %v1243_v3  ;;  %1057 = vmatpush3.bf16.msra.mxu1 %v1056_v29  ;;  %p1173_p5 = pnand %p1172_p3, %p1166_p0 }
  0x23   : > { %1058 = vmatprep.subr.bf16.mxu1 %v1243_v3 }
  0x25   : > { %1072 = vmatpush3.bf16.msra.mxu0 %v1047_v15 }
  0x26   : > { %1073 = vmatprep.subr.bf16.mxu0 %v1243_v3  ;;  %1060 = vmatpush3.bf16.msra.mxu1 %v1059_v32 }
  0x27   : > { %1061 = vmatprep.subr.bf16.mxu1 %v1243_v3 }
  0x29   : > { %1075 = vmatpush3.bf16.msra.mxu0 %v1050_v21 }
  0x2a   : > { %1076 = vmatprep.subr.bf16.mxu0 %v1243_v3  ;;  %1063 = vmatpush3.bf16.msra.mxu1 %v1062_v35 }
  0x2b   : > { %1064 = vmatprep.subr.bf16.mxu1 %v1243_v3 }
  0x2d   : > { %1078 = vmatpush3.bf16.msra.mxu0 %v1053_v25 }
  0x2e   : > { %1079 = vmatprep.subr.bf16.mxu0 %v1243_v3  ;;  %1066 = vmatpush3.bf16.msra.mxu1 %v1065_v38 }
  0x2f   : > { %1091 = vmatprep.subr.bf16.mxu1 %v1243_v3 }
  0x31   : > { %1081 = vmatpush3.bf16.msra.mxu0 %v1056_v29 }
  0x32   : > { %1082 = vmatprep.subr.bf16.mxu0 %v1243_v3 }
  0x35   : > { %1084 = vmatpush3.bf16.msra.mxu0 %v1059_v32 }
  0x36   : > { %1085 = vmatprep.subr.bf16.mxu0 %v1243_v3 }
  0x39   : > { %1087 = vmatpush3.bf16.msra.mxu0 %v1062_v35 }
  0x3a   : > { %1088 = vmatprep.subr.bf16.mxu0 %v1243_v3 }
  0x3d   : > { %1090 = vmatpush3.bf16.msra.mxu0 %v1065_v38 }
  0xf3   : > { %v404_v41 = vpop.f32.mrb[0].mxu0 }
  0xf4   : > { %v938_v43 = vpop.f32.mrb[1].mxu0  ;;  %v421_v45 = vadd.f32 %v859_v42, %v404_v41 }
  0xf6   : > { %972 = vmatmul.mubr.f32.vlgmr.msra.gmra.mrb[0].mxu1 %v421_v45  ;;  %v508_v48 = vmul.f32 %v421_v45, %v421_v45 }
  0xf7   : > { %1093 = vmatpush3.bf16.msra.mxu1 %v1092_v44  ;;  %1017 = vmatprep.mubr.msk.f32.mxu1 %vm1244_vm0, %v1245_v6 }
  0xf8   : > { %1007 = vmatmul.mubr.f32.vlgmr.msra.gmra.mrb[2].mxu0 %v508_v48  ;;  %1094 = vmatprep.subr.bf16.mxu1 %v1243_v3 }
  0xfb   : > { %1096 = vmatpush3.bf16.msra.mxu1 %v1095_v49 }
  0xfc   : > { %1097 = vmatprep.subr.bf16.mxu1 %v1243_v3 }
 0x1c9   : > { %v504_v55 = vpop.f32.mrb[0].mxu1 }
 0x1ca   : > { %v579_v56 = vmul.f32 %v504_v55, %v504_v55  ;;  %v973_v57 = vpop.f32.mrb[1].mxu1  ;;  %1018 = vmatmul.mubr.msk.f32.vlgmr.msra.gmra.mrb[2].mxu1 %vm588_vm2, %v504_v55 }
 0x1cb   : > { %v575_v58 = vpop.f32.mrb[2].mxu0  ;;  %1099 = vmatpush3.bf16.msra.mxu1 %v1098_v52  ;;  %1028 = vmatprep.mubr.msk.f32.mxu1 %vm1244_vm0, %v1245_v6  ;;  %v862_v6 = vld [vmem:[%s1540_s3] ss:$0 sm:$0xff] }
 0x1cc   : > { %v580_v60 = vsub.f32 %v575_v58, %v579_v56  ;;  %v1008_v61 = vpop.f32.mrb[3].mxu0  ;;  %1100 = vmatprep.subr.bf16.mxu1 %v1243_v3 }
 0x1ce   : > { %v581_v62 = vmax.f32 %v580_v60, 0.0 }
 0x1cf   : > { %1102 = vmatpush3.bf16.msra.mxu1 %v1101_v59 }
 0x1d0   : > { %v582_v63 = vadd.f32 0.001, %v581_v62 }
 0x1d2   : > { %1161 = vrsqrt.f32 %v582_v63 }
 0x1dc   : > { %v1162_v0 = vpop.eup %1161 }
 0x1dd   : > { %1029 = vmatmul.mubr.msk.f32.vlgmr.msra.gmra.mrb[4].mxu1 %vm588_vm2, %v1162_v0 }
 0x29d   : > { %v658_v1 = vpop.f32.mrb[2].mxu1 }
 0x29e   : > { %v1019_v2 = vpop.f32.mrb[3].mxu1  ;;  %v739_v4 = vsub.f32 %v421_v45, %v658_v1 }
 0x2b0   : > { %v735_v5 = vpop.f32.mrb[4].mxu1 }
 0x2b1   : > { %v740_v3 = vmul.f32 %v739_v4, %v735_v5  ;;  %v1030_v7 = vpop.f32.mrb[5].mxu1 }
 0x2b3   : > { %v748_v8 = vadd.f32 %v862_v6, %v740_v3 }
 0x2b5   : > { %v749_v9 = vmax.f32 %v748_v8, 0.0 }
 0x2b7   : > { %750 = vst [vmem:[%s305_s10] sm:$0xff] %v749_v9 }
 0x2b8   : > { %1176 = shalt.err (!%p1173_p5)
}
 0x2b9   : > { %s1177_s21 = scalar_lea.hbm %s1490_s17, 128  ;;  %s1181_s22 = scalar_lea.hbm %s1544_s7, 384 }
 0x2ba   : > { %p1178_p6 = scmp.ne.s32.totalorder %s1490_s17, %s1177_s21  ;;  %p1182_p10 = scmp.lt.u32.totalorder %s1490_s17, %s1544_s7 }
 0x2bb   : > { %p1183_p11 = scmp.lt.u32.totalorder %s1181_s22, %s1177_s21  ;;  %p1185_p13 = scmp.lt.u32.totalorder %s1177_s21, %s1490_s17 }
 0x2bc   : > { %p1179_p7 = pnand %p1178_p6, %p1327_p4 }
 0x2bd   : > { %p1184_p12 = por %p1183_p11, %p1182_p10 }
 0x2be   : > { %p1180_p9 = pneg %p1179_p7 }
 0x2bf   : > { %p1186_p0 = por %p1185_p13, %p1184_p12 }
 0x2c1   : > { %p1187_p1 = pnand %p1186_p0, %p1180_p9 }
 0x2c3   : > { %1190 = shalt.err (!%p1187_p1)
}
 0x2c4   : > { %1103 = dma.vmem_to_hbm [thread:$0]  (%p1327_p4), %s1492_s12, 128, %s1490_s17, %s752_s18  }
 0x2c5 PF: > { %p1109_p2 = scmp.ge.s32.totalorder %s1241_s29, 2  ;;  %s777_s16 = sand.u32 1, %s1221_s24  }
 0x2c6   : > { %s778_s19 = scalar_lea.sflag [#allocation3], %s777_s16 }
 0x2c7   : > { %p1106_p3 = pnand %p1109_p2, %p1334_p8 }
 0x2c9   : > { %1216 = dma.done.wait (!%p1106_p3), %s778_s19, 128  }
 0x2ca   : > { %1218 = vsyncadd (!%p1106_p3), %s778_s19, 4294967168  ;;  %s20_s29 = sadd.s32 1, %s1241_s29   ;;  %s1547_s24 = smov %s1225_s25 }
 0x2cb   : > { %p17_p5 = scmp.ge.s32.totalorder %s20_s29, 5   ;;  %s1548_s25 = smov %s1229_s26 }
 0x2cc   : > { %s1549_s26 = smov %s1340_s14  ;;  %s1550_s27 = smov %s1237_s28 }
 0x2cd   : > { %s1551_s28 = smov %s1553_s9  ;;  %19 = sbr.rel (!%p17_p5) target bundleno = 4 (0x4), region = 94 }
 0x2d4   :  { %783 = vsyncpa [#allocation3], 1 }
 0x2d5   :  { %785 = vsyncpa [#allocation3 + $0x1], 1 }

</bundles_post_ra>
